<compile_context>
chip_gen: v7x
topology: tpu7x:2x2x1
jax: 0.10.0
libtpu: 0.0.40
codegen_flags: <defaults>
</compile_context>

<pallas_src>
from functools import partial

import jax
import jax.numpy as jnp
from jax import lax
from jax.experimental import pallas as pl
from jax.experimental.pallas import tpu as pltpu


def _pick_tile(n, target, align):
    """Largest tile <= target that divides n and is a multiple of `align`;
    falls back to the full extent n (always a legal block shape)."""
    if n <= target:
        return n
    for t in range(target, align - 1, -1):
        if n % t == 0 and t % align == 0:
            return t
    return n


def _prep_kernel(scale_ref, x_ref, y_ref, z_ref, pos_ref):
    # scale_ref: SMEM (2,) f32 = [1/T, 1/sqrt(T)]
    inv_t = scale_ref[0]
    inv_sqrt_t = scale_ref[1]

    x = x_ref[...].astype(jnp.float32)
    y = y_ref[...].astype(jnp.float32)

    # F.normalize(dim=1): v * rsqrt(max(||v||^2, eps^2)) == v / max(||v||, eps)
    xn = x * lax.rsqrt(jnp.maximum(jnp.sum(x * x, axis=1, keepdims=True), 1e-24))
    yn = y * lax.rsqrt(jnp.maximum(jnp.sum(y * y, axis=1, keepdims=True), 1e-24))

    # Positive logit computed algebraically (no (2B,2B) partner mask):
    # pos_i = <xn_i, yn_i> / T, identical for rows i and i+B.
    pos = jnp.sum(xn * yn, axis=1, keepdims=True) * inv_t
    pos_ref[0] = pos
    pos_ref[1] = pos

    # Fold the temperature into the features: (z/sqrt(T)) @ (z/sqrt(T)).T == z@z.T / T
    z_ref[0] = (xn * inv_sqrt_t).astype(z_ref.dtype)
    z_ref[1] = (yn * inv_sqrt_t).astype(z_ref.dtype)


def _lse_kernel(pos_ref, zr_ref, zc_ref, out_ref, m_ref, l_ref):
    i = pl.program_id(0)  # row tile (parallel)
    j = pl.program_id(1)  # col tile (arbitrary, reduction)

    @pl.when(j == 0)
    def _():
        m_ref[...] = jnp.full_like(m_ref, -jnp.inf)
        l_ref[...] = jnp.zeros_like(l_ref)

    # NT matmul on the MXU: contract the feature (lane) axis of both operands,
    # no explicit transpose, f32 accumulation.
    s = lax.dot_general(
        zr_ref[...], zc_ref[...],
        dimension_numbers=(((1,), (1,)), ((), ())),
        preferred_element_type=jnp.float32)                      # (TR, TC)

    tr, tc = s.shape
    rid = i * tr + lax.broadcasted_iota(jnp.int32, (tr, tc), 0)
    cid = j * tc + lax.broadcasted_iota(jnp.int32, (tr, tc), 1)
    s = jnp.where(rid == cid, -jnp.inf, s)                       # mask self-sim only

    # Online logsumexp update.
    m_prev = m_ref[...]
    m_new = jnp.maximum(m_prev, jnp.max(s, axis=1, keepdims=True))
    alpha = jnp.exp(m_prev - m_new)                              # 0 on first tile
    p = jnp.exp(s - m_new)
    l_ref[...] = alpha * l_ref[...] + jnp.sum(p, axis=1, keepdims=True)
    m_ref[...] = m_new

    @pl.when(j == pl.num_programs(1) - 1)
    def _():
        out_ref[...] = m_ref[...] + jnp.log(l_ref[...]) - pos_ref[...]


def info_nce(x, y, temperature=0.5, mxu_dtype=None):
    """InfoNCE / NT-Xent loss.  Set mxu_dtype=jnp.bfloat16 for max MXU rate on
    v5e/v6e (normalization, accumulation and LSE stay in f32)."""
    B, C = x.shape
    assert y.shape == (B, C)
    n = 2 * B
    if mxu_dtype is None:
        mxu_dtype = x.dtype

    # Pad the feature (lane) axis to a multiple of 128: exact for both the
    # normalization and the dot product, restores full lane/MXU occupancy.
    cp = max(128, ((C + 127) // 128) * 128)
    if cp != C:
        pad = ((0, 0), (0, cp - C))
        x = jnp.pad(x, pad)
        y = jnp.pad(y, pad)

    scale = jnp.asarray([1.0 / temperature, temperature ** -0.5], dtype=jnp.float32)

    # ---- Kernel 1: normalize + fold temperature + positive logits ----------
    tb = _pick_tile(B, 512, 8)
    z2, pos2 = pl.pallas_call(
        _prep_kernel,
        out_shape=(
            jax.ShapeDtypeStruct((2, B, cp), mxu_dtype),
            jax.ShapeDtypeStruct((2, B, 1), jnp.float32),
        ),
        grid=(B // tb,),
        in_specs=[
            pl.BlockSpec(memory_space=pltpu.MemorySpace.SMEM),   # [1/T, 1/sqrt(T)]
            pl.BlockSpec((tb, cp), lambda i: (i, 0)),
            pl.BlockSpec((tb, cp), lambda i: (i, 0)),
        ],
        out_specs=(
            pl.BlockSpec((2, tb, cp), lambda i: (0, i, 0)),
            pl.BlockSpec((2, tb, 1), lambda i: (0, i, 0)),
        ),
        compiler_params=pltpu.CompilerParams(dimension_semantics=("parallel",)),
    )(scale, x, y)

    z = z2.reshape(n, cp)      # contiguous reshape == concatenate([xn, yn], 0)
    pos = pos2.reshape(n, 1)

    # ---- Kernel 2: tiled online logsumexp over the (2B, 2B) similarities ---
    tr = _pick_tile(n, 256, 8)
    tc = _pick_tile(n, 512, 128)
    if tc == n:
        tc = _pick_tile(n, 512, 8)

    per_row = pl.pallas_call(
        _lse_kernel,
        out_shape=jax.ShapeDtypeStruct((n, 1), jnp.float32),
        grid=(n // tr, n // tc),
        in_specs=[
            pl.BlockSpec((tr, 1), lambda i, j: (i, 0)),    # pos
            pl.BlockSpec((tr, cp), lambda i, j: (i, 0)),   # z rows
            pl.BlockSpec((tc, cp), lambda i, j: (j, 0)),   # z cols
        ],
        out_specs=pl.BlockSpec((tr, 1), lambda i, j: (i, 0)),
        scratch_shapes=[
            pltpu.VMEM((tr, 1), jnp.float32),              # running max m
            pltpu.VMEM((tr, 1), jnp.float32),              # running sum l
        ],
        compiler_params=pltpu.CompilerParams(
            dimension_semantics=("parallel", "arbitrary")),
    )(pos, z, z)

    # Final mean over 2B per-row losses (trivial reduction, done in the wrapper).
    return jnp.mean(per_row)


def _info_nce_ref(x, y, temperature=0.5):
    """Pure-JAX reference mirroring the PyTorch forward."""
    B = x.shape[0]
    xn = x / jnp.maximum(jnp.linalg.norm(x, axis=1, keepdims=True), 1e-12)
    yn = y / jnp.maximum(jnp.linalg.norm(y, axis=1, keepdims=True), 1e-12)
    z = jnp.concatenate([xn, yn], axis=0)
    S = (z @ z.T) / temperature
    n = 2 * B
    idx = jnp.arange(n)
    pos = S[idx, (idx + B) % n]
    masked = jnp.where(jnp.eye(n, dtype=bool), -jnp.inf, S)
    lse = jax.scipy.special.logsumexp(masked, axis=1)
    return jnp.mean(lse - pos)


if __name__ == "__main__":
    B, C = 8, 32
    key = jax.random.PRNGKey(0)
    kx, ky = jax.random.split(key)
    x = jax.random.normal(kx, (B, C), dtype=jnp.float32)
    y = jax.random.normal(ky, (B, C), dtype=jnp.float32)

    ref = _info_nce_ref(x, y, temperature=0.5)

    # Exact path (f32 MXU operands).
    loss_f32 = jax.block_until_ready(info_nce(x, y, temperature=0.5))
    assert jnp.allclose(loss_f32, ref, atol=2e-4, rtol=2e-4), (loss_f32, ref)

    # Fast path: bf16 MXU operands (recommended on v5e/v6e), f32 accumulation/LSE.
    loss_bf16 = jax.block_until_ready(
        info_nce(x, y, temperature=0.5, mxu_dtype=jnp.bfloat16))
    assert jnp.allclose(loss_bf16, ref, atol=3e-2, rtol=3e-2), (loss_bf16, ref)

    print("KERNEL_OK")
</pallas_src>

<mosaic_0001>
module attributes {stable_mosaic.version = 11 : i64} {
  func.func @_prep_kernel(%arg0: i32, %arg1: memref<2xf32, #tpu.memory_space<smem>>, %arg2: memref<8x128xf32, #tpu.memory_space<vmem>>, %arg3: memref<8x128xf32, #tpu.memory_space<vmem>>, %arg4: memref<2x8x128xf32, #tpu.memory_space<vmem>>, %arg5: memref<2x8x1xf32, #tpu.memory_space<vmem>>) attributes {dimension_semantics = [#tpu.dimension_semantics<parallel>], iteration_bounds = array<i64: 1>, scalar_prefetch = 0 : i64, scratch_operands = 0 : i64, tpu.core_type = #tpu.core_type<tc>, window_params = [{transform_indices = @transform_0, window_bounds = array<i64: 2>}, {transform_indices = @transform_1, window_bounds = array<i64: 8, 128>}, {transform_indices = @transform_2, window_bounds = array<i64: 8, 128>}, {transform_indices = @transform_3, window_bounds = array<i64: 2, 8, 128>}, {transform_indices = @transform_4, window_bounds = array<i64: 2, 8, 1>}]} {
    %c0 = arith.constant 0 : index
    %0 = memref.load %arg1[%c0] : memref<2xf32, #tpu.memory_space<smem>>
    %c1 = arith.constant 1 : index
    %1 = memref.load %arg1[%c1] : memref<2xf32, #tpu.memory_space<smem>>
    %c0_0 = arith.constant 0 : index
    %c0_1 = arith.constant 0 : index
    %2 = vector.load %arg2[%c0_0, %c0_1] : memref<8x128xf32, #tpu.memory_space<vmem>>, vector<8x128xf32>
    %c0_2 = arith.constant 0 : index
    %c0_3 = arith.constant 0 : index
    %3 = vector.load %arg3[%c0_2, %c0_3] : memref<8x128xf32, #tpu.memory_space<vmem>>, vector<8x128xf32>
    %4 = arith.mulf %2, %2 : vector<8x128xf32>
    %cst = arith.constant dense<0.000000e+00> : vector<8xf32>
    %5 = vector.multi_reduction <add>, %4, %cst [1] : vector<8x128xf32> to vector<8xf32>
    %6 = vector.shape_cast %5 : vector<8xf32> to vector<8x1xf32>
    %cst_4 = arith.constant 1.000000e-24 : f32
    %7 = vector.broadcast %cst_4 : f32 to vector<8x1xf32>
    %8 = arith.maximumf %6, %7 : vector<8x1xf32>
    %9 = math.rsqrt %8 : vector<8x1xf32>
    %10 = vector.broadcast %9 : vector<8x1xf32> to vector<8x128xf32>
    %11 = arith.mulf %2, %10 : vector<8x128xf32>
    %12 = arith.mulf %3, %3 : vector<8x128xf32>
    %cst_5 = arith.constant dense<0.000000e+00> : vector<8xf32>
    %13 = vector.multi_reduction <add>, %12, %cst_5 [1] : vector<8x128xf32> to vector<8xf32>
    %14 = vector.shape_cast %13 : vector<8xf32> to vector<8x1xf32>
    %cst_6 = arith.constant 1.000000e-24 : f32
    %15 = vector.broadcast %cst_6 : f32 to vector<8x1xf32>
    %16 = arith.maximumf %14, %15 : vector<8x1xf32>
    %17 = math.rsqrt %16 : vector<8x1xf32>
    %18 = vector.broadcast %17 : vector<8x1xf32> to vector<8x128xf32>
    %19 = arith.mulf %3, %18 : vector<8x128xf32>
    %20 = arith.mulf %11, %19 : vector<8x128xf32>
    %cst_7 = arith.constant dense<0.000000e+00> : vector<8xf32>
    %21 = vector.multi_reduction <add>, %20, %cst_7 [1] : vector<8x128xf32> to vector<8xf32>
    %22 = vector.shape_cast %21 : vector<8xf32> to vector<8x1xf32>
    %23 = vector.broadcast %0 : f32 to vector<8x1xf32>
    %24 = arith.mulf %22, %23 : vector<8x1xf32>
    %c0_8 = arith.constant 0 : index
    %c0_9 = arith.constant 0 : index
    %c0_10 = arith.constant 0 : index
    %25 = vector.load %arg5[%c0_8, %c0_9, %c0_10] : memref<2x8x1xf32, #tpu.memory_space<vmem>>, vector<1x8x1xf32>
    %26 = vector.shape_cast %25 : vector<1x8x1xf32> to vector<8x1xf32>
    %27 = vector.shape_cast %24 : vector<8x1xf32> to vector<1x8x1xf32>
    tpu.vector_store %arg5[%c0_8, %c0_9, %c0_10], %27 {strides = array<i32>} : memref<2x8x1xf32, #tpu.memory_space<vmem>>, vector<1x8x1xf32>,
    %c1_11 = arith.constant 1 : index
    %c0_12 = arith.constant 0 : index
    %c0_13 = arith.constant 0 : index
    %28 = vector.load %arg5[%c1_11, %c0_12, %c0_13] : memref<2x8x1xf32, #tpu.memory_space<vmem>>, vector<1x8x1xf32>
    %29 = vector.shape_cast %28 : vector<1x8x1xf32> to vector<8x1xf32>
    %30 = vector.shape_cast %24 : vector<8x1xf32> to vector<1x8x1xf32>
    tpu.vector_store %arg5[%c1_11, %c0_12, %c0_13], %30 {strides = array<i32>} : memref<2x8x1xf32, #tpu.memory_space<vmem>>, vector<1x8x1xf32>,
    %31 = vector.broadcast %1 : f32 to vector<8x128xf32>
    %32 = arith.mulf %11, %31 : vector<8x128xf32>
    %c0_14 = arith.constant 0 : index
    %c0_15 = arith.constant 0 : index
    %c0_16 = arith.constant 0 : index
    %33 = vector.load %arg4[%c0_14, %c0_15, %c0_16] : memref<2x8x128xf32, #tpu.memory_space<vmem>>, vector<1x8x128xf32>
    %34 = vector.shape_cast %33 : vector<1x8x128xf32> to vector<8x128xf32>
    %35 = vector.shape_cast %32 : vector<8x128xf32> to vector<1x8x128xf32>
    tpu.vector_store %arg4[%c0_14, %c0_15, %c0_16], %35 {strides = array<i32>} : memref<2x8x128xf32, #tpu.memory_space<vmem>>, vector<1x8x128xf32>,
    %36 = vector.broadcast %1 : f32 to vector<8x128xf32>
    %37 = arith.mulf %19, %36 : vector<8x128xf32>
    %c1_17 = arith.constant 1 : index
    %c0_18 = arith.constant 0 : index
    %c0_19 = arith.constant 0 : index
    %38 = vector.load %arg4[%c1_17, %c0_18, %c0_19] : memref<2x8x128xf32, #tpu.memory_space<vmem>>, vector<1x8x128xf32>
    %39 = vector.shape_cast %38 : vector<1x8x128xf32> to vector<8x128xf32>
    %40 = vector.shape_cast %37 : vector<8x128xf32> to vector<1x8x128xf32>
    tpu.vector_store %arg4[%c1_17, %c0_18, %c0_19], %40 {strides = array<i32>} : memref<2x8x128xf32, #tpu.memory_space<vmem>>, vector<1x8x128xf32>,
    return
  }
  func.func @transform_0(%arg0: i32) -> i32 {
    %c0_i32 = arith.constant 0 : i32
    %c0_i32_0 = arith.constant 0 : i32
    return %c0_i32 : i32
  }
  func.func @transform_1(%arg0: i32) -> (i32, i32) {
    %c0_i32 = arith.constant 0 : i32
    %c0_i32_0 = arith.constant 0 : i32
    return %arg0, %c0_i32 : i32, i32
  }
  func.func @transform_2(%arg0: i32) -> (i32, i32) {
    %c0_i32 = arith.constant 0 : i32
    %c0_i32_0 = arith.constant 0 : i32
    return %arg0, %c0_i32 : i32, i32
  }
  func.func @transform_3(%arg0: i32) -> (i32, i32, i32) {
    %c0_i32 = arith.constant 0 : i32
    %c0_i32_0 = arith.constant 0 : i32
    %c0_i32_1 = arith.constant 0 : i32
    return %c0_i32, %arg0, %c0_i32_0 : i32, i32, i32
  }
  func.func @transform_4(%arg0: i32) -> (i32, i32, i32) {
    %c0_i32 = arith.constant 0 : i32
    %c0_i32_0 = arith.constant 0 : i32
    %c0_i32_1 = arith.constant 0 : i32
    return %c0_i32, %arg0, %c0_i32_0 : i32, i32, i32
  }
}

</mosaic_0001>

<bundles_post_ra>
// kernel: tpu_custom_call.1
= control target key start
LH: loop header
LB: loop body
LE: loop exit
PB: predicated region body
PF: predicated region fallthrough
CT: control target
= control target key end

     0   :  { %10 = vsyncpa [#allocation5], 0  ;;  %s287_s0 = inlined_call_operand.hbm [shape: f32[2], index: 0, kind: input, shape index: {}]   ;;  %s288_s1 = inlined_call_operand.hbm [shape: f32[8,128], index: 1, kind: input, shape index: {}]   ;;  %s289_s2 = inlined_call_operand.hbm [shape: f32[8,128], index: 2, kind: input, shape index: {}]   ;;  %s290_s3 = inlined_call_operand.hbm [shape: f32[2,8,128], index: 3, kind: output, shape index: {0}]   ;;  %s291_s4 = inlined_call_operand.vmem [shape: f32[2,8,1], index: 4, kind: output, shape index: {1}]  }
   0x1   :  { %11 = vsyncpa [#allocation3], 0 }
   0x2   :  { %12 = vsyncpa [#allocation8], 0 }
   0x3   :  { %13 = vsyncpa [#allocation4], 0  ;;  %s118_s17 = scalar_lea.hbm %s287_s0, 16 }
   0x4   :  { %p119_p0 = scmp.ne.s32.totalorder %s287_s0, %s118_s17  ;;  %p122_p1 = scmp.lt.u32.totalorder %s118_s17, %s287_s0 }
   0x6   :  { %p124_p2 = pnand %p122_p1, %p119_p0 }
   0x8   :  { %127 = shalt.err (!%p124_p2)
}
   0x9   :  { %s202_s22 = smov [#allocation2]   ;;  %s203_s25 = smov [#allocation6]  }
   0xa   :  { %21 = dma.hbm_to_smem %s287_s0, 16, %s202_s22, [#allocation5]  }
   0xb   :  { %s28_s26 = sshll.u32 %s203_s25, 4  ;;  %s204_s27 = smov [#allocation7]   ;;  %s29_s26 = int_to_ptr.vmem [resolvable:$true] %s28_s26 }
   0xc   :  { %s38_s28 = sshll.u32 %s204_s27, 4  ;;  %s128_s5 = scalar_lea.hbm %s288_s1, 128  ;;  %s39_s28 = int_to_ptr.vmem [resolvable:$true] %s38_s28 }
   0xd   :  { %p129_p3 = scmp.ne.s32.totalorder %s288_s1, %s128_s5  ;;  %p132_p4 = scmp.lt.u32.totalorder %s128_s5, %s288_s1 }
   0xf   :  { %p134_p5 = pnand %p132_p4, %p129_p3 }
  0x11   :  { %137 = shalt.err (!%p134_p5)
}
  0x12   :  { %s138_s0 = scalar_lea.vmem %s29_s26, 128  ;;  %p143_p7 = scmp.lt.s32.totalorder %s29_s26, %s29_s26 }
  0x13   :  { %p139_p6 = scmp.ne.s32.totalorder %s29_s26, %s138_s0  ;;  %p144_p8 = scmp.lt.s32.totalorder %s138_s0, %s138_s0 }
  0x15   :  { %p145_p9 = por %p144_p8, %p143_p7 }
  0x17   :  { %p146_p10 = pnand %p145_p9, %p139_p6 }
  0x19   :  { %149 = shalt.err (!%p146_p10)
}
  0x1a   :  { %31 = dma.hbm_to_vmem [thread:$0]  %s288_s1, 128, %s29_s26, [#allocation3]  }
  0x1b   :  { %s150_s14 = scalar_lea.hbm %s289_s2, 128 }
  0x1c   :  { %p151_p11 = scmp.ne.s32.totalorder %s289_s2, %s150_s14  ;;  %p154_p12 = scmp.lt.u32.totalorder %s150_s14, %s289_s2 }
  0x1e   :  { %p156_p13 = pnand %p154_p12, %p151_p11 }
  0x20   :  { %159 = shalt.err (!%p156_p13)
}
  0x21   :  { %s160_s19 = scalar_lea.vmem %s39_s28, 128  ;;  %p165_p1 = scmp.lt.s32.totalorder %s39_s28, %s39_s28 }
  0x22   :  { %p161_p0 = scmp.ne.s32.totalorder %s39_s28, %s160_s19  ;;  %p166_p2 = scmp.lt.s32.totalorder %s160_s19, %s160_s19 }
  0x24   :  { %p167_p3 = por %p166_p2, %p165_p1 }
  0x26   :  { %p168_p4 = pnand %p167_p3, %p161_p0 }
  0x28   :  { %171 = shalt.err (!%p168_p4)
}
  0x29   :  { %41 = dma.hbm_to_vmem [thread:$0]  %s289_s2, 128, %s39_s28, [#allocation8]  }
  0x2a   :  { %194 = dma.done.wait [#allocation5], 16  }
  0x2b   :  { %195 = vsyncadd [#allocation5], 4294967280 }
  0x2c   :  { %196 = dma.done.wait [#allocation3], 128  }
  0x2d   :  { %197 = vsyncadd [#allocation3], 4294967168 }
  0x2e   :  { %198 = dma.done.wait [#allocation8], 128  }
  0x2f   :  { %199 = vsyncadd [#allocation8], 4294967168 }
  0x30   :  { %51 = sfence }
  0x31   :  { %v54_v0 = vld [vmem:[#allocation6] sm:$0xff]  ;;  %v55_v1 = vld [vmem:[#allocation7] sm:$0xff]  ;;  %s106_s21 = sld [smem:[#allocation2 + $0x1]]  ;;  %s205_s2 = smov [#allocation9]  }
  0x32   :  { %v56_v2 = vmul.f32 %v54_v0, %v54_v0  ;;  %v62_v3 = vmul.f32 %v55_v1, %v55_v1  ;;  %s88_s22 = sshll.u32 %s205_s2, 4  ;;  %s89_s22 = int_to_ptr.vmem [resolvable:$true] %s88_s22 }
  0x33   :  { %s172_s23 = scalar_lea.vmem %s89_s22, 256  ;;  %p177_p6 = scmp.lt.s32.totalorder %s89_s22, %s89_s22 }
  0x34   :  { %57 = vadd.xlane.f32.xlu0 %v56_v2  ;;  %p173_p5 = scmp.ne.s32.totalorder %s89_s22, %s172_s23  ;;  %p178_p7 = scmp.lt.s32.totalorder %s172_s23, %s172_s23 }
  0x36   :  { %p179_p8 = por %p178_p7, %p177_p6 }
  0x37   :  { %v77_v9 = vstv %s106_s21 }
  0x38   :  { %63 = vadd.xlane.f32.xlu0 %v62_v3  ;;  %p180_p9 = pnand %p179_p8, %p173_p5 }
  0xc1   :  { %v58_v4 = vpop.xlane.xlu0 %57 }
  0xc2   :  { %v59_v5 = vmax.f32 %v58_v4, 1e-24 }
  0xc4   :  { %114 = vrsqrt.f32 %v59_v5 }
  0xc5   :  { %v64_v6 = vpop.xlane.xlu0 %63 }
  0xc6   :  { %v65_v7 = vmax.f32 %v64_v6, 1e-24 }
  0xc8   :  { %116 = vrsqrt.f32 %v65_v7 }
  0xce   :  { %v115_v8 = vpop.eup %114 }
  0xcf   :  { %v61_v10 = vmul.f32 %v115_v8, %v54_v0 }
  0xd1   :  { %v78_v11 = vmul.f32 %v77_v9, %v61_v10 }
  0xd2   :  { %v117_v12 = vpop.eup %116 }
  0xd3   :  { %v67_v13 = vmul.f32 %v117_v12, %v55_v1  ;;  %79 = vst [vmem:[#allocation9] sm:$0xff] %v78_v11 }
  0xd5   :  { %v68_v14 = vmul.f32 %v67_v13, %v61_v10  ;;  %v80_v15 = vmul.f32 %v77_v9, %v67_v13 }
  0xd7   :  { %69 = vadd.xlane.f32.xlu1 %v68_v14  ;;  %82 = vst [vmem:[#allocation9 + $0x8] sm:$0xff] %v80_v15 }
  0xd8   :  { %183 = shalt.err (!%p180_p9)
}
  0xd9   :  { %s184_s26 = scalar_lea.hbm %s290_s3, 256 }
  0xda   :  { %p185_p10 = scmp.ne.s32.totalorder %s290_s3, %s184_s26  ;;  %p188_p11 = scmp.lt.u32.totalorder %s184_s26, %s290_s3 }
  0xdc   :  { %p190_p12 = pnand %p188_p11, %p185_p10 }
  0xde   :  { %193 = shalt.err (!%p190_p12)
}
  0xdf   :  { %s206_s5 = smov 128   ;;  %s207_s6 = smov 8   ;;  %vm73_vm0 = vcmask 7168  }
  0xe0   :  { %94 = dma.vmem_to_hbm [thread:$0]  %s89_s22, 256, %s290_s3, [#allocation4], %s206_s5, %s206_s5, %s207_s6  }
  0xe1   :  { %s52_s9 = sld [smem:[#allocation2]] }
  0xe7   :  { %v71_v16 = vstv %s52_s9 }
 0x164   :  { %v70_v17 = vpop.xlane.xlu1 %69 }
 0x165   :  { %v72_v18 = vmul.f32 %v71_v16, %v70_v17 }
 0x167   :  { %74 = vst.msk [vmem:[%s291_s4] sm:$0xff] %vm73_vm0, %v72_v18  ;;  %107 = vst.msk [vmem:[%s291_s4 + $0x8] sm:$0xff] %vm73_vm0, %v72_v18 }
 0x168   :  { %200 = dma.done.wait [#allocation4], 256  }
 0x169   :  { %201 = vsyncadd [#allocation4], 4294967040 }
 0x16a   :  { %102 = vsyncpa [#allocation3], 1 }
 0x16b   :  { %103 = vsyncpa [#allocation8], 1 }
 0x16c   :  { %104 = vsyncpa [#allocation4], 1 }
 0x16d   :  { %105 = vsyncpa [#allocation5], 1 }

</bundles_post_ra>
